<compile_context>
chip_gen: v5e
topology: v5e:2x2
jax: 0.10.0
libtpu: 0.0.40
codegen_flags: <defaults>
</compile_context>

<pallas_src>
import jax
import jax.numpy as jnp
from jax.experimental import pallas as pl
from jax.experimental.pallas import tpu as pltpu

FC_OUT_FEATURES = [64, 64, 64]
BN_EPS = 1e-5  # PyTorch BatchNorm1d default
LANE = 128     # vreg lane width


def tfc_kernel(x_ref,
               w0_ref, b0_ref,
               w1_ref, b1_ref,
               w2_ref, b2_ref,
               wf_ref, bf_ref,
               out_ref):
    # Input tile in native dtype; affine + hardtanh input quant in f32.
    x = x_ref[...].astype(jnp.float32)
    h = jnp.clip(2.0 * x - 1.0, -1.0, 1.0)
    # TODO(synk): Dropout(p=0.2) layers are identity in eval-mode forward; omitted.

    def fc_act(h, w_ref, b_ref):
        # BN already folded into w/b.  bf16 matmul with f32 accumulation;
        # bias + clip epilogue in f32.
        z = jnp.dot(h.astype(w_ref.dtype), w_ref[...],
                    preferred_element_type=jnp.float32) + b_ref[...]
        return jnp.clip(z, -1.0, 1.0)

    h = fc_act(h, w0_ref, b0_ref)
    h = fc_act(h, w1_ref, b1_ref)
    h = fc_act(h, w2_ref, b2_ref)

    # Final Linear (no BN / act); padded logit columns have zero weight/bias.
    out_ref[...] = (jnp.dot(h.astype(wf_ref.dtype), wf_ref[...],
                            preferred_element_type=jnp.float32)
                    + bf_ref[...])


def make_params(key, in_features, num_classes=10):
    """Deterministic synthetic parameters matching TFC.__init__ shapes.

    Layout per hidden layer: [w (in,out), b (1,out), gamma, beta, mean, var],
    then [w_final, b_final].
    """
    params = []
    fan_in = in_features
    for out_features in FC_OUT_FEATURES:
        key, kw, kb, kg, kbe, km, kv = jax.random.split(key, 7)
        scale = 1.0 / jnp.sqrt(jnp.float32(fan_in))
        w = jax.random.uniform(kw, (fan_in, out_features), jnp.float32,
                               -scale, scale)                     # (in, out)
        b = jax.random.uniform(kb, (1, out_features), jnp.float32, -scale, scale)
        gamma = 1.0 + 0.1 * jax.random.normal(kg, (1, out_features), jnp.float32)
        beta = 0.1 * jax.random.normal(kbe, (1, out_features), jnp.float32)
        mean = 0.1 * jax.random.normal(km, (1, out_features), jnp.float32)
        var = jax.random.uniform(kv, (1, out_features), jnp.float32, 0.5, 1.5)
        params += [w, b, gamma, beta, mean, var]
        fan_in = out_features
    key, kw, kb = jax.random.split(key, 3)
    scale = 1.0 / jnp.sqrt(jnp.float32(fan_in))
    wf = jax.random.uniform(kw, (fan_in, num_classes), jnp.float32, -scale, scale)
    bf = jax.random.uniform(kb, (1, num_classes), jnp.float32, -scale, scale)
    params += [wf, bf]
    return params


def prepare_params(raw_params, num_classes=10, lane=LANE,
                   compute_dtype=jnp.bfloat16):
    """Fold BatchNorm into the Linears and pad feature dims.

    * Layer-0 weight keeps its unpadded input rows (x is fed unpadded).
    * Hidden output widths pad to `lane` (128) so activations are lane-dense.
    * Final logits pad only to a multiple of 8 (16 for 10 classes) to cut
      output HBM writeback 8x vs 128-column padding.
    Padded rows/cols are exactly zero, so padded activations clip to 0 and
    contribute nothing downstream.  Weights in `compute_dtype`, biases f32.
    """
    def rup(n, m):
        return ((n + m - 1) // m) * m

    def pad2(a, rows, cols):
        return jnp.pad(a, ((0, rows - a.shape[0]), (0, cols - a.shape[1])))

    prepared = []
    for i in range(len(FC_OUT_FEATURES)):
        w, b, g, be, m, v = raw_params[6 * i:6 * i + 6]
        scale = g * jax.lax.rsqrt(v + BN_EPS)          # (1, out)
        w_fold = w * scale                              # per-out-column scale
        b_fold = (b - m) * scale + be
        in_rows = w.shape[0] if i == 0 else rup(w.shape[0], lane)
        out_cols = rup(w.shape[1], lane)
        prepared += [pad2(w_fold, in_rows, out_cols).astype(compute_dtype),
                     pad2(b_fold, 1, out_cols).astype(jnp.float32)]
    wl, bl = raw_params[-2:]
    in_rows = rup(wl.shape[0], lane)
    out_cols = rup(wl.shape[1], 8)   # narrow logit padding (8x less writeback)
    prepared += [pad2(wl, in_rows, out_cols).astype(compute_dtype),
                 pad2(bl, 1, out_cols).astype(jnp.float32)]
    return prepared


def tfc_forward(x, prepared, num_classes=10, tile_b=2048):
    """Run the Pallas TFC kernel over a batch grid; returns (B, num_classes)."""
    batch = x.shape[0]
    x_flat = x.reshape(batch, -1)            # x.view(B,-1): free, no copy/cast
    f_in = x_flat.shape[1]
    assert prepared[0].shape[0] == f_in, "layer-0 weight rows must match input width"
    n_pad = prepared[-1].shape[1]            # padded logit width (e.g. 16)

    def rup(n, m):
        return ((n + m - 1) // m) * m

    # Small batches -> a single grid step (fewer fixed per-step overheads on
    # single-TC v5e/v6e); large batches naturally give >=2 "parallel" tiles
    # which shard across v7x's 2 TensorCores.
    tile_b = max(8, min(tile_b, rup(batch, 8)))
    num_tiles = pl.cdiv(batch, tile_b)       # ragged last tile handled by Pallas

    # Weights/biases: full-array blocks with constant index maps -> fetched
    # once, VMEM-resident across all grid steps (total ~100 KB).
    param_specs = [pl.BlockSpec(p.shape, lambda i: (0, 0)) for p in prepared]

    out = pl.pallas_call(
        tfc_kernel,
        out_shape=jax.ShapeDtypeStruct((batch, n_pad), jnp.float32),
        grid=(num_tiles,),
        in_specs=[pl.BlockSpec((tile_b, f_in), lambda i: (i, 0))] + param_specs,
        out_specs=pl.BlockSpec((tile_b, n_pad), lambda i: (i, 0)),
        compiler_params=pltpu.CompilerParams(
            dimension_semantics=("parallel",)),
    )(x_flat, *prepared)
    return out[:, :num_classes]


def tfc_reference_raw(x, raw_params, num_classes=10):
    """Pure-JAX f32 reference of the original module (unfolded BN)."""
    h = x.reshape(x.shape[0], -1).astype(jnp.float32)
    h = jnp.clip(2.0 * h - 1.0, -1.0, 1.0)
    for i in range(len(FC_OUT_FEATURES)):
        w, b, g, be, m, v = raw_params[6 * i:6 * i + 6]
        z = h @ w + b
        z = (z - m) * (g / jnp.sqrt(v + BN_EPS)) + be
        h = jnp.clip(z, -1.0, 1.0)
    wl, bl = raw_params[-2:]
    return h @ wl + bl


def tfc_reference_prepared(x, prepared, num_classes=10):
    """Pure-JAX mirror of the kernel math (folded BN, padding, bf16 matmuls)."""
    compute_dtype = prepared[0].dtype
    h = x.reshape(x.shape[0], -1).astype(jnp.float32)
    h = jnp.clip(2.0 * h - 1.0, -1.0, 1.0)
    for i in range(len(FC_OUT_FEATURES)):
        w, b = prepared[2 * i], prepared[2 * i + 1]
        z = jnp.dot(h.astype(compute_dtype), w,
                    preferred_element_type=jnp.float32) + b
        h = jnp.clip(z, -1.0, 1.0)
    wl, bl = prepared[-2:]
    out = jnp.dot(h.astype(compute_dtype), wl,
                  preferred_element_type=jnp.float32) + bl
    return out[:, :num_classes]


if __name__ == "__main__":
    # Small shapes: batch=200, in_ch=1, in_features=(16, 16) -> 256 flat features.
    batch, in_ch, H, W = 200, 1, 16, 16
    num_classes = 10

    key = jax.random.PRNGKey(0)
    key, kx = jax.random.split(key)
    x = jax.random.uniform(kx, (batch, in_ch, H, W), jnp.float32)  # NCHW input

    raw_params = make_params(key, in_features=in_ch * H * W,
                             num_classes=num_classes)

    # Check 1 (semantics): BN-folding + padding preserves the f32 forward.
    prep_f32 = prepare_params(raw_params, num_classes, compute_dtype=jnp.float32)
    ref_raw = tfc_reference_raw(x, raw_params, num_classes)
    ref_folded = tfc_reference_prepared(x, prep_f32, num_classes)
    assert jnp.allclose(ref_folded, ref_raw, atol=1e-4, rtol=1e-4)

    # Check 2 (kernel, single grid step at the default tile).
    prepared = prepare_params(raw_params, num_classes, compute_dtype=jnp.bfloat16)
    ref = tfc_reference_prepared(x, prepared, num_classes)
    out = jax.block_until_ready(tfc_forward(x, prepared, num_classes))
    assert out.shape == (batch, num_classes)
    assert jnp.allclose(out, ref, atol=5e-3, rtol=5e-3)

    # Check 3 (kernel, multi-step grid with a ragged last tile).
    out_multi = jax.block_until_ready(
        tfc_forward(x, prepared, num_classes, tile_b=64))
    assert jnp.allclose(out_multi, ref, atol=5e-3, rtol=5e-3)

    print("KERNEL_OK")
</pallas_src>

<mosaic_0001>
module attributes {stable_mosaic.version = 11 : i64} {
  func.func @tfc_kernel(%arg0: i32, %arg1: memref<200x256xf32, #tpu.memory_space<vmem>>, %arg2: memref<256x128xbf16, #tpu.memory_space<vmem>>, %arg3: memref<1x128xf32, #tpu.memory_space<vmem>>, %arg4: memref<128x128xbf16, #tpu.memory_space<vmem>>, %arg5: memref<1x128xf32, #tpu.memory_space<vmem>>, %arg6: memref<128x128xbf16, #tpu.memory_space<vmem>>, %arg7: memref<1x128xf32, #tpu.memory_space<vmem>>, %arg8: memref<128x16xbf16, #tpu.memory_space<vmem>>, %arg9: memref<1x16xf32, #tpu.memory_space<vmem>>, %arg10: memref<200x16xf32, #tpu.memory_space<vmem>>) attributes {dimension_semantics = [#tpu.dimension_semantics<parallel>], iteration_bounds = array<i64: 1>, scalar_prefetch = 0 : i64, scratch_operands = 0 : i64, tpu.core_type = #tpu.core_type<tc>, window_params = [{transform_indices = @transform_0, window_bounds = array<i64: 200, 256>}, {pipeline_mode = #tpu.pipeline_mode<synchronous>, transform_indices = @transform_1, window_bounds = array<i64: 256, 128>}, {pipeline_mode = #tpu.pipeline_mode<synchronous>, transform_indices = @transform_2, window_bounds = array<i64: 1, 128>}, {pipeline_mode = #tpu.pipeline_mode<synchronous>, transform_indices = @transform_3, window_bounds = array<i64: 128, 128>}, {pipeline_mode = #tpu.pipeline_mode<synchronous>, transform_indices = @transform_4, window_bounds = array<i64: 1, 128>}, {pipeline_mode = #tpu.pipeline_mode<synchronous>, transform_indices = @transform_5, window_bounds = array<i64: 128, 128>}, {pipeline_mode = #tpu.pipeline_mode<synchronous>, transform_indices = @transform_6, window_bounds = array<i64: 1, 128>}, {pipeline_mode = #tpu.pipeline_mode<synchronous>, transform_indices = @transform_7, window_bounds = array<i64: 128, 16>}, {pipeline_mode = #tpu.pipeline_mode<synchronous>, transform_indices = @transform_8, window_bounds = array<i64: 1, 16>}, {transform_indices = @transform_9, window_bounds = array<i64: 200, 16>}]} {
    %c0 = arith.constant 0 : index
    %c0_0 = arith.constant 0 : index
    %0 = vector.load %arg1[%c0, %c0_0] : memref<200x256xf32, #tpu.memory_space<vmem>>, vector<200x256xf32>
    %cst = arith.constant 2.000000e+00 : f32
    %1 = vector.broadcast %cst : f32 to vector<200x256xf32>
    %2 = arith.mulf %1, %0 : vector<200x256xf32>
    %cst_1 = arith.constant 1.000000e+00 : f32
    %3 = vector.broadcast %cst_1 : f32 to vector<200x256xf32>
    %4 = arith.subf %2, %3 : vector<200x256xf32>
    %cst_2 = arith.constant -1.000000e+00 : f32
    %cst_3 = arith.constant 1.000000e+00 : f32
    %5 = vector.broadcast %cst_2 : f32 to vector<200x256xf32>
    %6 = arith.maximumf %5, %4 : vector<200x256xf32>
    %7 = vector.broadcast %cst_3 : f32 to vector<200x256xf32>
    %8 = arith.minimumf %7, %6 : vector<200x256xf32>
    %9 = arith.truncf %8 : vector<200x256xf32> to vector<200x256xbf16>
    %c0_4 = arith.constant 0 : index
    %c0_5 = arith.constant 0 : index
    %10 = vector.load %arg2[%c0_4, %c0_5] : memref<256x128xbf16, #tpu.memory_space<vmem>>, vector<256x128xbf16>
    %cst_6 = arith.constant dense<0.000000e+00> : vector<200x128xf32>
    %11 = tpu.matmul %9, %10, %cst_6 {dimension_numbers = #tpu.dot_dimension_numbers<[1], [0], [0], [1], [0, 0, 1, 1], [], []>} : vector<200x256xbf16>, vector<256x128xbf16>, vector<200x128xf32> -> vector<200x128xf32>
    %c0_7 = arith.constant 0 : index
    %c0_8 = arith.constant 0 : index
    %12 = vector.load %arg3[%c0_7, %c0_8] : memref<1x128xf32, #tpu.memory_space<vmem>>, vector<1x128xf32>
    %13 = vector.broadcast %12 : vector<1x128xf32> to vector<200x128xf32>
    %14 = arith.addf %11, %13 : vector<200x128xf32>
    %cst_9 = arith.constant -1.000000e+00 : f32
    %cst_10 = arith.constant 1.000000e+00 : f32
    %15 = vector.broadcast %cst_9 : f32 to vector<200x128xf32>
    %16 = arith.maximumf %15, %14 : vector<200x128xf32>
    %17 = vector.broadcast %cst_10 : f32 to vector<200x128xf32>
    %18 = arith.minimumf %17, %16 : vector<200x128xf32>
    %19 = arith.truncf %18 : vector<200x128xf32> to vector<200x128xbf16>
    %c0_11 = arith.constant 0 : index
    %c0_12 = arith.constant 0 : index
    %20 = vector.load %arg4[%c0_11, %c0_12] : memref<128x128xbf16, #tpu.memory_space<vmem>>, vector<128x128xbf16>
    %cst_13 = arith.constant dense<0.000000e+00> : vector<200x128xf32>
    %21 = tpu.matmul %19, %20, %cst_13 {dimension_numbers = #tpu.dot_dimension_numbers<[1], [0], [0], [1], [0, 0, 1, 1], [], []>} : vector<200x128xbf16>, vector<128x128xbf16>, vector<200x128xf32> -> vector<200x128xf32>
    %c0_14 = arith.constant 0 : index
    %c0_15 = arith.constant 0 : index
    %22 = vector.load %arg5[%c0_14, %c0_15] : memref<1x128xf32, #tpu.memory_space<vmem>>, vector<1x128xf32>
    %23 = vector.broadcast %22 : vector<1x128xf32> to vector<200x128xf32>
    %24 = arith.addf %21, %23 : vector<200x128xf32>
    %cst_16 = arith.constant -1.000000e+00 : f32
    %cst_17 = arith.constant 1.000000e+00 : f32
    %25 = vector.broadcast %cst_16 : f32 to vector<200x128xf32>
    %26 = arith.maximumf %25, %24 : vector<200x128xf32>
    %27 = vector.broadcast %cst_17 : f32 to vector<200x128xf32>
    %28 = arith.minimumf %27, %26 : vector<200x128xf32>
    %29 = arith.truncf %28 : vector<200x128xf32> to vector<200x128xbf16>
    %c0_18 = arith.constant 0 : index
    %c0_19 = arith.constant 0 : index
    %30 = vector.load %arg6[%c0_18, %c0_19] : memref<128x128xbf16, #tpu.memory_space<vmem>>, vector<128x128xbf16>
    %cst_20 = arith.constant dense<0.000000e+00> : vector<200x128xf32>
    %31 = tpu.matmul %29, %30, %cst_20 {dimension_numbers = #tpu.dot_dimension_numbers<[1], [0], [0], [1], [0, 0, 1, 1], [], []>} : vector<200x128xbf16>, vector<128x128xbf16>, vector<200x128xf32> -> vector<200x128xf32>
    %c0_21 = arith.constant 0 : index
    %c0_22 = arith.constant 0 : index
    %32 = vector.load %arg7[%c0_21, %c0_22] : memref<1x128xf32, #tpu.memory_space<vmem>>, vector<1x128xf32>
    %33 = vector.broadcast %32 : vector<1x128xf32> to vector<200x128xf32>
    %34 = arith.addf %31, %33 : vector<200x128xf32>
    %cst_23 = arith.constant -1.000000e+00 : f32
    %cst_24 = arith.constant 1.000000e+00 : f32
    %35 = vector.broadcast %cst_23 : f32 to vector<200x128xf32>
    %36 = arith.maximumf %35, %34 : vector<200x128xf32>
    %37 = vector.broadcast %cst_24 : f32 to vector<200x128xf32>
    %38 = arith.minimumf %37, %36 : vector<200x128xf32>
    %39 = arith.truncf %38 : vector<200x128xf32> to vector<200x128xbf16>
    %c0_25 = arith.constant 0 : index
    %c0_26 = arith.constant 0 : index
    %40 = vector.load %arg8[%c0_25, %c0_26] : memref<128x16xbf16, #tpu.memory_space<vmem>>, vector<128x16xbf16>
    %cst_27 = arith.constant dense<0.000000e+00> : vector<200x16xf32>
    %41 = tpu.matmul %39, %40, %cst_27 {dimension_numbers = #tpu.dot_dimension_numbers<[1], [0], [0], [1], [0, 0, 1, 1], [], []>} : vector<200x128xbf16>, vector<128x16xbf16>, vector<200x16xf32> -> vector<200x16xf32>
    %c0_28 = arith.constant 0 : index
    %c0_29 = arith.constant 0 : index
    %42 = vector.load %arg9[%c0_28, %c0_29] : memref<1x16xf32, #tpu.memory_space<vmem>>, vector<1x16xf32>
    %43 = vector.broadcast %42 : vector<1x16xf32> to vector<200x16xf32>
    %44 = arith.addf %41, %43 : vector<200x16xf32>
    %c0_30 = arith.constant 0 : index
    %c0_31 = arith.constant 0 : index
    %45 = vector.load %arg10[%c0_30, %c0_31] : memref<200x16xf32, #tpu.memory_space<vmem>>, vector<200x16xf32>
    tpu.vector_store %arg10[%c0_30, %c0_31], %44 {strides = array<i32>} : memref<200x16xf32, #tpu.memory_space<vmem>>, vector<200x16xf32>,
    return
  }
  func.func @transform_0(%arg0: i32) -> (i32, i32) {
    %c0_i32 = arith.constant 0 : i32
    %c0_i32_0 = arith.constant 0 : i32
    return %arg0, %c0_i32 : i32, i32
  }
  func.func @transform_1(%arg0: i32) -> (i32, i32) {
    %c0_i32 = arith.constant 0 : i32
    %c0_i32_0 = arith.constant 0 : i32
    %c0_i32_1 = arith.constant 0 : i32
    return %c0_i32, %c0_i32_0 : i32, i32
  }
  func.func @transform_2(%arg0: i32) -> (i32, i32) {
    %c0_i32 = arith.constant 0 : i32
    %c0_i32_0 = arith.constant 0 : i32
    %c0_i32_1 = arith.constant 0 : i32
    return %c0_i32, %c0_i32_0 : i32, i32
  }
  func.func @transform_3(%arg0: i32) -> (i32, i32) {
    %c0_i32 = arith.constant 0 : i32
    %c0_i32_0 = arith.constant 0 : i32
    %c0_i32_1 = arith.constant 0 : i32
    return %c0_i32, %c0_i32_0 : i32, i32
  }
  func.func @transform_4(%arg0: i32) -> (i32, i32) {
    %c0_i32 = arith.constant 0 : i32
    %c0_i32_0 = arith.constant 0 : i32
    %c0_i32_1 = arith.constant 0 : i32
    return %c0_i32, %c0_i32_0 : i32, i32
  }
  func.func @transform_5(%arg0: i32) -> (i32, i32) {
    %c0_i32 = arith.constant 0 : i32
    %c0_i32_0 = arith.constant 0 : i32
    %c0_i32_1 = arith.constant 0 : i32
    return %c0_i32, %c0_i32_0 : i32, i32
  }
  func.func @transform_6(%arg0: i32) -> (i32, i32) {
    %c0_i32 = arith.constant 0 : i32
    %c0_i32_0 = arith.constant 0 : i32
    %c0_i32_1 = arith.constant 0 : i32
    return %c0_i32, %c0_i32_0 : i32, i32
  }
  func.func @transform_7(%arg0: i32) -> (i32, i32) {
    %c0_i32 = arith.constant 0 : i32
    %c0_i32_0 = arith.constant 0 : i32
    %c0_i32_1 = arith.constant 0 : i32
    return %c0_i32, %c0_i32_0 : i32, i32
  }
  func.func @transform_8(%arg0: i32) -> (i32, i32) {
    %c0_i32 = arith.constant 0 : i32
    %c0_i32_0 = arith.constant 0 : i32
    %c0_i32_1 = arith.constant 0 : i32
    return %c0_i32, %c0_i32_0 : i32, i32
  }
  func.func @transform_9(%arg0: i32) -> (i32, i32) {
    %c0_i32 = arith.constant 0 : i32
    %c0_i32_0 = arith.constant 0 : i32
    return %arg0, %c0_i32 : i32, i32
  }
}

</mosaic_0001>

<bundles_post_ra>
// kernel: tpu_custom_call.1
= control target key start
LH: loop header
LB: loop body
LE: loop exit
PB: predicated region body
PF: predicated region fallthrough
CT: control target
= control target key end

     0   :  { %14 = vsyncpa [#allocation3], 0  ;;  %s2121_s0 = inlined_call_operand.hbm [shape: f32[200,256], index: 0, kind: input, shape index: {}]   ;;  %s2122_s1 = inlined_call_operand.hbm [shape: bf16[256,128], index: 1, kind: input, shape index: {}]   ;;  %s2123_s2 = inlined_call_operand.vmem [shape: f32[1,128], index: 2, kind: input, shape index: {}]   ;;  %s2124_s3 = inlined_call_operand.vmem [shape: bf16[128,128], index: 3, kind: input, shape index: {}]   ;;  %s2125_s4 = inlined_call_operand.vmem [shape: f32[1,128], index: 4, kind: input, shape index: {}]   ;;  %s2126_s5 = inlined_call_operand.hbm [shape: bf16[128,128], index: 5, kind: input, shape index: {}]   ;;  %s2127_s6 = inlined_call_operand.vmem [shape: f32[1,128], index: 6, kind: input, shape index: {}]   ;;  %s2128_s7 = inlined_call_operand.vmem [shape: bf16[128,16], index: 7, kind: input, shape index: {}]   ;;  %s2129_s8 = inlined_call_operand.vmem [shape: f32[1,16], index: 8, kind: input, shape index: {}]   ;;  %s2130_s9 = inlined_call_operand.vmem [shape: f32[200,16], index: 9, kind: output, shape index: {}]  }
   0x1   :  { %15 = vsyncpa [#allocation5], 0  ;;  %s33_s11 = sshll.u32 %s2122_s1, 4  ;;  %s1763_s12 = smov [#allocation4]   ;;  %s34_s11 = int_to_ptr.hbm [resolvable:$true] %s33_s11 }
   0x2   :  { %s35_s13 = sshll.u32 %s1763_s12, 4  ;;  %s20_s16 = sshll.u32 %s2121_s0, 4  ;;  %s36_s13 = int_to_ptr.vmem [resolvable:$true] %s35_s13  ;;  %s21_s16 = int_to_ptr.hbm [resolvable:$true] %s20_s16 }
   0x3   :  { %s1764_s17 = smov 64   ;;  %s1765_s18 = smov 4  }
   0x4   :  { %41 = dma.hbm_to_vmem [thread:$0]  %s34_s11, 2048, %s36_s13, [#allocation5], %s1764_s17, %s1764_s17, %s1765_s18  }
   0x5   :  { %s1766_s19 = smov [#allocation2]   ;;  %s1767_s21 = smov 256  }
   0x6   :  { %s22_s20 = sshll.u32 %s1766_s19, 4  ;;  %s1768_s22 = smov 16   ;;  %s23_s20 = int_to_ptr.vmem [resolvable:$true] %s22_s20 }
   0x7   :  { %28 = dma.hbm_to_vmem [thread:$0]  %s21_s16, 6400, %s23_s20, [#allocation3], %s1767_s21, %s1767_s21, %s1768_s22  }
   0x8   :  { %s52_s24 = sshll.u32 %s2126_s5, 4  ;;  %s1769_s25 = smov [#allocation6]   ;;  %s53_s24 = int_to_ptr.hbm [resolvable:$true] %s52_s24 }
   0x9   :  { %s54_s26 = sshll.u32 %s1769_s25, 4  ;;  %s55_s26 = int_to_ptr.vmem [resolvable:$true] %s54_s26 }
   0xa   :  { %60 = dma.hbm_to_vmem [thread:$0]  %s53_s24, 1024, %s55_s26, [#allocation5], %s1764_s17, %s1764_s17, %s1765_s18  }
   0xb   :  { %1759 = dma.done.wait [#allocation3], 6400  }
   0xc   :  { %1760 = vsyncadd [#allocation3], 4294960896 }
   0xd   :  { %1761 = dma.done.wait [#allocation5], 3072  }
   0xe   :  { %1762 = vsyncadd [#allocation5], 4294964224  ;;  %v1619_v0 = vld [vmem:[#allocation4 + $0x38] sm:$0xff]  ;;  %v1618_v1 = vld [vmem:[#allocation4 + $0x30] sm:$0xff]  ;;  %vm1245_vm0 = vcmask 130048  }
   0xf   :  { %1652 = vmatpush.bf16.msra.mxu1 %v1619_v0  ;;  %487 = vmatpush.bf16.msra.mxu0 %v1619_v0  ;;  %v1617_v2 = vld [vmem:[#allocation4 + $0x28] sm:$0xff]  ;;  %v1616_v3 = vld [vmem:[#allocation4 + $0x20] sm:$0xff]  ;;  %v1615_v4 = vld [vmem:[#allocation4 + $0x18] sm:$0xff] }
  0x10   :  { %1653 = vmatpush.bf16.msra.mxu2 %v1619_v0  ;;  %1654 = vmatpush.bf16.msra.mxu3 %v1619_v0  ;;  %v95_v5 = vld [vmem:[#allocation2 + $0x80] sm:$0xff]  ;;  %v97_v6 = vld [vmem:[#allocation2 + $0x90] sm:$0xff]  ;;  %v1613_v12 = vld [vmem:[#allocation4 + $0x8] sm:$0xff] }
  0x11   :  { %v145_v7 = vmul.f32 2.0, %v95_v5  ;;  %v147_v8 = vmul.f32 2.0, %v97_v6  ;;  %v1614_v9 = vld [vmem:[#allocation4 + $0x10] sm:$0xff]  ;;  %v1612_v15 = vld [vmem:[#allocation4] sm:$0xff]  ;;  %v1627_v16 = vld [vmem:[#allocation4 + $0x78] sm:$0xff] }
  0x12   :  { %v99_v18 = vld [vmem:[#allocation2 + $0xa0] sm:$0xff]  ;;  %v101_v19 = vld [vmem:[#allocation2 + $0xb0] sm:$0xff]  ;;  %v1625_v23 = vld [vmem:[#allocation4 + $0x68] sm:$0xff] }
  0x13   :  { %1655 = vmatpush.bf16.msra.mxu1 %v1618_v1  ;;  %488 = vmatpush.bf16.msra.mxu0 %v1618_v1  ;;  %v1293_v10 = vadd.f32 -1.0, %v145_v7  ;;  %v1295_v11 = vadd.f32 -1.0, %v147_v8  ;;  %v1626_v20 = vld [vmem:[#allocation4 + $0x70] sm:$0xff]  ;;  %v149_v21 = vmul.f32 2.0, %v99_v18  ;;  %v151_v22 = vmul.f32 2.0, %v101_v19  ;;  %v1624_v26 = vld [vmem:[#allocation4 + $0x60] sm:$0xff] }
  0x14   :  { %1656 = vmatpush.bf16.msra.mxu2 %v1618_v1  ;;  %1657 = vmatpush.bf16.msra.mxu3 %v1618_v1  ;;  %v1623_v29 = vld [vmem:[#allocation4 + $0x58] sm:$0xff]  ;;  %v103_v31 = vld [vmem:[#allocation2 + $0xc0] sm:$0xff]  ;;  %v105_v32 = vld [vmem:[#allocation2 + $0xd0] sm:$0xff] }
  0x15   :  { %v1343_v13 = vclamps-f32 %v1293_v10, 1.0  ;;  %v1345_v14 = vclamps-f32 %v1295_v11, 1.0  ;;  %v1297_v24 = vadd.f32 -1.0, %v149_v21  ;;  %v1299_v25 = vadd.f32 -1.0, %v151_v22  ;;  %v79_v33 = vld [vmem:[#allocation2] sm:$0xff]  ;;  %v81_v34 = vld [vmem:[#allocation2 + $0x10] sm:$0xff] }
  0x16   :  { %v1622_v35 = vld [vmem:[#allocation4 + $0x50] sm:$0xff]  ;;  %v129_v36 = vmul.f32 2.0, %v79_v33  ;;  %v131_v37 = vmul.f32 2.0, %v81_v34  ;;  %v153_v38 = vmul.f32 2.0, %v103_v31  ;;  %v155_v39 = vmul.f32 2.0, %v105_v32  ;;  %v1621_v42 = vld [vmem:[#allocation4 + $0x48] sm:$0xff] }
  0x17   :  { %1658 = vmatpush.bf16.msra.mxu1 %v1617_v2  ;;  %489 = vmatpush.bf16.msra.mxu0 %v1617_v2  ;;  %v337_v17 = vpack.c.bf16 %v1345_v14, %v1343_v13  ;;  %v1347_v27 = vclamps-f32 %v1297_v24, 1.0  ;;  %v1349_v28 = vclamps-f32 %v1299_v25, 1.0  ;;  %v1620_v48 = vld [vmem:[#allocation4 + $0x40] sm:$0xff]  ;;  %v107_v52 = vld [vmem:[#allocation2 + $0xe0] sm:$0xff]  ;;  %v80_v6 = vld [vmem:[#allocation2 + $0x8] sm:$0xff] }
  0x18   :  { %1659 = vmatpush.bf16.msra.mxu2 %v1617_v2  ;;  %1660 = vmatpush.bf16.msra.mxu3 %v1617_v2  ;;  %v1277_v40 = vadd.f32 -1.0, %v129_v36  ;;  %v1279_v41 = vadd.f32 -1.0, %v131_v37  ;;  %v1301_v45 = vadd.f32 -1.0, %v153_v38  ;;  %v1303_v46 = vadd.f32 -1.0, %v155_v39  ;;  %v109_v53 = vld [vmem:[#allocation2 + $0xf0] sm:$0xff]  ;;  %v83_v54 = vld [vmem:[#allocation2 + $0x20] sm:$0xff] }
  0x19   :  { %v339_v30 = vpack.c.bf16 %v1349_v28, %v1347_v27  ;;  %v85_v55 = vld [vmem:[#allocation2 + $0x30] sm:$0xff]  ;;  %v133_v56 = vmul.f32 2.0, %v83_v54  ;;  %v157_v58 = vmul.f32 2.0, %v107_v52  ;;  %v159_v59 = vmul.f32 2.0, %v109_v53  ;;  %v82_v7 = vld [vmem:[#allocation2 + $0x18] sm:$0xff]  ;;  %v87_v8 = vld [vmem:[#allocation2 + $0x40] sm:$0xff] }
  0x1a   :  { %v1327_v43 = vclamps-f32 %v1277_v40, 1.0  ;;  %v1329_v44 = vclamps-f32 %v1279_v41, 1.0  ;;  %v1351_v49 = vclamps-f32 %v1301_v45, 1.0  ;;  %v1353_v50 = vclamps-f32 %v1303_v46, 1.0  ;;  %v84_v24 = vld [vmem:[#allocation2 + $0x28] sm:$0xff]  ;;  %v86_v25 = vld [vmem:[#allocation2 + $0x38] sm:$0xff] }
  0x1b   :  { %1661 = vmatpush.bf16.msra.mxu1 %v1616_v3  ;;  %490 = vmatpush.bf16.msra.mxu0 %v1616_v3  ;;  %v135_v57 = vmul.f32 2.0, %v85_v55  ;;  %v1281_v60 = vadd.f32 -1.0, %v133_v56  ;;  %v1305_v0 = vadd.f32 -1.0, %v157_v58  ;;  %v1307_v1 = vadd.f32 -1.0, %v159_v59  ;;  %v93_v27 = vld [vmem:[#allocation2 + $0x70] sm:$0xff]  ;;  %v94_v52 = vld [vmem:[#allocation2 + $0x78] sm:$0xff] }
  0x1c   :  { %1662 = vmatpush.bf16.msra.mxu2 %v1616_v3  ;;  %1663 = vmatpush.bf16.msra.mxu3 %v1616_v3  ;;  %v329_v47 = vpack.c.bf16 %v1329_v44, %v1327_v43  ;;  %v341_v51 = vpack.c.bf16 %v1353_v50, %v1351_v49  ;;  %v137_v10 = vmul.f32 2.0, %v87_v8  ;;  %v132_v13 = vmul.f32 2.0, %v82_v7  ;;  %v90_v43 = vld [vmem:[#allocation2 + $0x58] sm:$0xff] }
  0x1d   :  { %v1283_v61 = vadd.f32 -1.0, %v135_v57  ;;  %v1331_v62 = vclamps-f32 %v1281_v60, 1.0  ;;  %v1355_v3 = vclamps-f32 %v1305_v0, 1.0  ;;  %v136_v31 = vmul.f32 2.0, %v86_v25  ;;  %v96_v60 = vld [vmem:[#allocation2 + $0x88] sm:$0xff]  ;;  %v115_v25 = vld [vmem:[#allocation2 + $0x120] sm:$0xff] }
  0x1e   :  { %v1285_v14 = vadd.f32 -1.0, %v137_v10  ;;  %v1280_v19 = vadd.f32 -1.0, %v132_v13  ;;  %v140_v45 = vmul.f32 2.0, %v90_v43  ;;  %v144_v54 = vmul.f32 2.0, %v94_v52  ;;  %v100_v10 = vld [vmem:[#allocation2 + $0xa8] sm:$0xff]  ;;  %v110_v52 = vld [vmem:[#allocation2 + $0xf8] sm:$0xff] }
  0x1f   :  { %1664 = vmatpush.bf16.msra.mxu1 %v1615_v4  ;;  %491 = vmatpush.bf16.msra.mxu0 %v1615_v4  ;;  %v1333_v63 = vclamps-f32 %v1283_v61, 1.0  ;;  %v1284_v37 = vadd.f32 -1.0, %v136_v31  ;;  %v98_v61 = vld [vmem:[#allocation2 + $0x98] sm:$0xff]  ;;  %v104_v31 = vld [vmem:[#allocation2 + $0xc8] sm:$0xff] }
  0x20   :  { %1665 = vmatpush.bf16.msra.mxu2 %v1615_v4  ;;  %1666 = vmatpush.bf16.msra.mxu3 %v1615_v4  ;;  %v1357_v4 = vclamps-f32 %v1307_v1, 1.0  ;;  %v1330_v22 = vclamps-f32 %v1280_v19, 1.0  ;;  %v1292_v56 = vadd.f32 -1.0, %v144_v54 }
  0x21   :  { %v331_v2 = vpack.c.bf16 %v1333_v63, %v1331_v62  ;;  %v1334_v40 = vclamps-f32 %v1284_v37, 1.0  ;;  %v146_v62 = vmul.f32 2.0, %v96_v60  ;;  %v148_v63 = vmul.f32 2.0, %v98_v61  ;;  %v1628_v60 = vld [vmem:[%s2124_s3] sm:$0xff] }
  0x22   :  { %v343_v5 = vpack.c.bf16 %v1357_v4, %v1355_v3  ;;  %v1342_v58 = vclamps-f32 %v1292_v56, 1.0  ;;  %v111_v4 = vld [vmem:[#allocation2 + $0x100] sm:$0xff]  ;;  %v1629_v56 = vld [vmem:[%s2124_s3 + $0x8] sm:$0xff] }
  0x23   :  { %1667 = vmatpush.bf16.msra.mxu1 %v1614_v9  ;;  %492 = vmatpush.bf16.msra.mxu0 %v1614_v9  ;;  %v1294_v0 = vadd.f32 -1.0, %v146_v62  ;;  %v1296_v1 = vadd.f32 -1.0, %v148_v63  ;;  %v161_v7 = vmul.f32 2.0, %v111_v4  ;;  %v119_v61 = vld [vmem:[#allocation2 + $0x140] sm:$0xff]  ;;  %v121_v62 = vld [vmem:[#allocation2 + $0x150] sm:$0xff] }
  0x24   :  { %1668 = vmatpush.bf16.msra.mxu2 %v1614_v9  ;;  %1669 = vmatpush.bf16.msra.mxu3 %v1614_v9  ;;  %v89_v9 = vld [vmem:[#allocation2 + $0x50] sm:$0xff] }
  0x25   :  { %v139_v11 = vmul.f32 2.0, %v89_v9  ;;  %v1346_v3 = vclamps-f32 %v1296_v1, 1.0  ;;  %v169_v1 = vmul.f32 2.0, %v119_v61 }
  0x27   :  { %1670 = vmatpush.bf16.msra.mxu1 %v1613_v12  ;;  %493 = vmatpush.bf16.msra.mxu0 %v1613_v12 }
  0x28   :  { %1671 = vmatpush.bf16.msra.mxu2 %v1613_v12  ;;  %1672 = vmatpush.bf16.msra.mxu3 %v1613_v12  ;;  %v130_v12 = vmul.f32 2.0, %v80_v6 }
  0x2a   :  { %v1278_v18 = vadd.f32 -1.0, %v130_v12  ;;  %v1309_v12 = vadd.f32 -1.0, %v161_v7 }
  0x2b   :  { %1673 = vmatpush.bf16.msra.mxu1 %v1612_v15  ;;  %494 = vmatpush.bf16.msra.mxu0 %v1612_v15 }
  0x2c   :  { %1674 = vmatpush.bf16.msra.mxu2 %v1612_v15  ;;  %1675 = vmatpush.bf16.msra.mxu3 %v1612_v15  ;;  %v1287_v15 = vadd.f32 -1.0, %v139_v11  ;;  %v1328_v21 = vclamps-f32 %v1278_v18, 1.0  ;;  %v102_v11 = vld [vmem:[#allocation2 + $0xb8] sm:$0xff] }
  0x2e   :  { %515 = vmatmul.bf16.vlgmr.msra.gmra.mxu1 %v337_v17  ;;  %495 = vmatmul.bf16.vlgmr.msra.gmra.mxu0 %v329_v47  ;;  %v1337_v17 = vclamps-f32 %v1287_v15, 1.0  ;;  %v1288_v47 = vadd.f32 -1.0, %v140_v45  ;;  %v152_v15 = vmul.f32 2.0, %v102_v11  ;;  %v1632_v45 = vld [vmem:[%s2124_s3 + $0x20] sm:$0xff]  ;;  %v112_v11 = vld [vmem:[#allocation2 + $0x108] sm:$0xff] }
  0x2f   :  { %560 = vmatpush.bf16.msrb.mxu1 %v1627_v16  ;;  %v1335_v16 = vclamps-f32 %v1285_v14, 1.0  ;;  %v150_v14 = vmul.f32 2.0, %v100_v10 }
  0x30   :  { %v1338_v49 = vclamps-f32 %v1288_v47, 1.0 }
  0x31   :  { %v1298_v19 = vadd.f32 -1.0, %v150_v14  ;;  %v162_v14 = vmul.f32 2.0, %v112_v11 }
  0x33   :  { %561 = vmatpush.bf16.msrb.mxu1 %v1626_v20  ;;  %v333_v20 = vpack.c.bf16 %v1337_v17, %v1335_v16  ;;  %v1359_v16 = vclamps-f32 %v1309_v12, 1.0  ;;  %v114_v12 = vld [vmem:[#allocation2 + $0x118] sm:$0xff] }
  0x37   :  { %562 = vmatpush.bf16.msrb.mxu1 %v1625_v23  ;;  %v330_v23 = vpack.c.bf16 %v1330_v22, %v1328_v21  ;;  %v1635_v22 = vld [vmem:[%s2124_s3 + $0x38] sm:$0xff] }
  0x38   :  { %764 = vmatpush.bf16.msrb.mxu2 %v1635_v22  ;;  %v125_v22 = vld [vmem:[#allocation2 + $0x170] sm:$0xff] }
  0x3b   :  { %563 = vmatpush.bf16.msrb.mxu1 %v1624_v26  ;;  %v91_v26 = vld [vmem:[#allocation2 + $0x60] sm:$0xff] }
  0x3c   :  { %v141_v28 = vmul.f32 2.0, %v91_v26  ;;  %v117_v26 = vld [vmem:[#allocation2 + $0x130] sm:$0xff] }
  0x3e   :  { %520 = vmatmul.bf16.gmra.mxu1 %v339_v30  ;;  %500 = vmatmul.bf16.gmra.mxu0 %v331_v2  ;;  %v134_v30 = vmul.f32 2.0, %v84_v24  ;;  %v1289_v32 = vadd.f32 -1.0, %v141_v28  ;;  %v1344_v2 = vclamps-f32 %v1294_v0, 1.0  ;;  %v165_v28 = vmul.f32 2.0, %v115_v25 }
  0x3f   :  { %564 = vmatpush.bf16.msrb.mxu1 %v1623_v29  ;;  %v143_v29 = vmul.f32 2.0, %v93_v27 }
  0x40   :  { %v1339_v34 = vclamps-f32 %v1289_v32, 1.0  ;;  %v1282_v36 = vadd.f32 -1.0, %v134_v30  ;;  %v338_v6 = vpack.c.bf16 %v1346_v3, %v1344_v2  ;;  %v106_v32 = vld [vmem:[#allocation2 + $0xd8] sm:$0xff]  ;;  %v171_v2 = vmul.f32 2.0, %v121_v62 }
  0x41   :  { %v1291_v33 = vadd.f32 -1.0, %v143_v29  ;;  %v167_v29 = vmul.f32 2.0, %v117_v26  ;;  %v156_v37 = vmul.f32 2.0, %v106_v32  ;;  %v1317_v3 = vadd.f32 -1.0, %v169_v1 }
  0x42   :  { %v1332_v39 = vclamps-f32 %v1282_v36, 1.0  ;;  %v154_v36 = vmul.f32 2.0, %v104_v31  ;;  %v1319_v4 = vadd.f32 -1.0, %v171_v2  ;;  %v175_v26 = vmul.f32 2.0, %v125_v22 }
  0x43   :  { %565 = vmatpush.bf16.msrb.mxu1 %v1622_v35  ;;  %v1341_v35 = vclamps-f32 %v1291_v33, 1.0  ;;  %v1313_v33 = vadd.f32 -1.0, %v165_v28  ;;  %v1304_v43 = vadd.f32 -1.0, %v156_v37  ;;  %v1367_v7 = vclamps-f32 %v1317_v3, 1.0 }
  0x44   :  { %v332_v41 = vpack.c.bf16 %v1334_v40, %v1332_v39  ;;  %v1633_v40 = vld [vmem:[%s2124_s3 + $0x28] sm:$0xff]  ;;  %v1323_v28 = vadd.f32 -1.0, %v175_v26 }
  0x45   :  { %v335_v38 = vpack.c.bf16 %v1341_v35, %v1339_v34  ;;  %v1315_v34 = vadd.f32 -1.0, %v167_v29  ;;  %v1634_v35 = vld [vmem:[%s2124_s3 + $0x30] sm:$0xff]  ;;  %v1354_v47 = vclamps-f32 %v1304_v43, 1.0 }
  0x46   :  { %765 = vmatpush.bf16.msrb.mxu2 %v1634_v35  ;;  %v1373_v32 = vclamps-f32 %v1323_v28, 1.0  ;;  %v118_v35 = vld [vmem:[#allocation2 + $0x138] sm:$0xff] }
  0x47   :  { %566 = vmatpush.bf16.msrb.mxu1 %v1621_v42  ;;  %v88_v42 = vld [vmem:[#allocation2 + $0x48] sm:$0xff]  ;;  %v1365_v39 = vclamps-f32 %v1315_v34, 1.0 }
  0x48   :  { %v138_v44 = vmul.f32 2.0, %v88_v42  ;;  %v1302_v42 = vadd.f32 -1.0, %v154_v36  ;;  %v116_v34 = vld [vmem:[#allocation2 + $0x128] sm:$0xff]  ;;  %v1872_v36 = vld [vmem:[%s2123_s2] ss:$0 sm:$0xff] }
  0x4a   :  { %v1286_v46 = vadd.f32 -1.0, %v138_v44  ;;  %766 = vmatpush.bf16.msrb.mxu2 %v1633_v40  ;;  %v166_v40 = vmul.f32 2.0, %v116_v34 }
  0x4b   :  { %567 = vmatpush.bf16.msrb.mxu1 %v1620_v48 }
  0x4c   :  { %v1336_v48 = vclamps-f32 %v1286_v46, 1.0  ;;  %v1352_v46 = vclamps-f32 %v1302_v42, 1.0 }
  0x4e   :  { %525 = vmatmul.bf16.gmra.mxu1 %v341_v51  ;;  %505 = vmatmul.bf16.gmra.mxu0 %v333_v20  ;;  %v334_v50 = vpack.c.bf16 %v1338_v49, %v1336_v48  ;;  %v92_v51 = vld [vmem:[#allocation2 + $0x68] sm:$0xff]  ;;  %v1300_v20 = vadd.f32 -1.0, %v152_v15  ;;  %v1631_v48 = vld [vmem:[%s2124_s3 + $0x18] sm:$0xff]  ;;  %v342_v49 = vpack.c.bf16 %v1354_v47, %v1352_v46  ;;  %v164_v15 = vmul.f32 2.0, %v114_v12 }
  0x4f   :  { %v142_v53 = vmul.f32 2.0, %v92_v51  ;;  %767 = vmatpush.bf16.msrb.mxu2 %v1632_v45  ;;  %v108_v51 = vld [vmem:[#allocation2 + $0xe8] sm:$0xff]  ;;  %v1314_v45 = vadd.f32 -1.0, %v166_v40 }
  0x50   :  { %v1350_v24 = vclamps-f32 %v1300_v20, 1.0  ;;  %v158_v54 = vmul.f32 2.0, %v108_v51  ;;  %v123_v20 = vld [vmem:[#allocation2 + $0x160] sm:$0xff] }
  0x51   :  { %v1290_v55 = vadd.f32 -1.0, %v142_v53  ;;  %v1630_v53 = vld [vmem:[%s2124_s3 + $0x10] sm:$0xff]  ;;  %v173_v25 = vmul.f32 2.0, %v123_v20  ;;  %v127_v20 = vld [vmem:[#allocation2 + $0x180] sm:$0xff] }
  0x53   :  { %v1340_v57 = vclamps-f32 %v1290_v55, 1.0  ;;  %768 = vmatpush.bf16.msrb.mxu2 %v1631_v48  ;;  %v160_v55 = vmul.f32 2.0, %v110_v52  ;;  %v1364_v52 = vclamps-f32 %v1314_v45, 1.0 }
  0x55   :  { %v336_v59 = vpack.c.bf16 %v1342_v58, %v1340_v57  ;;  %v1306_v57 = vadd.f32 -1.0, %v158_v54  ;;  %v1308_v58 = vadd.f32 -1.0, %v160_v55 }
  0x57   :  { %769 = vmatpush.bf16.msrb.mxu2 %v1630_v53  ;;  %v1356_v63 = vclamps-f32 %v1306_v57, 1.0  ;;  %v1358_v0 = vclamps-f32 %v1308_v58, 1.0  ;;  %v120_v58 = vld [vmem:[#allocation2 + $0x148] sm:$0xff] }
  0x58   :  { %v170_v62 = vmul.f32 2.0, %v120_v58 }
  0x5a   :  { %v1318_v3 = vadd.f32 -1.0, %v170_v62 }
  0x5b   :  { %770 = vmatpush.bf16.msrb.mxu2 %v1629_v56 }
  0x5c   :  { %v1368_v11 = vclamps-f32 %v1318_v3, 1.0 }
  0x5e   :  { %530 = vmatmul.bf16.gmra.mxu1 %v343_v5  ;;  %510 = vmatmul.bf16.gmra.mxu0 %v335_v38  ;;  %v113_v5 = vld [vmem:[#allocation2 + $0x110] sm:$0xff]  ;;  %v1363_v38 = vclamps-f32 %v1313_v33, 1.0 }
  0x5f   :  { %v163_v8 = vmul.f32 2.0, %v113_v5  ;;  %771 = vmatpush.bf16.msrb.mxu2 %v1628_v60  ;;  %v122_v60 = vld [vmem:[#allocation2 + $0x158] sm:$0xff] }
  0x61   :  { %v1311_v13 = vadd.f32 -1.0, %v163_v8  ;;  %v1369_v8 = vclamps-f32 %v1319_v4, 1.0 }
  0x63   :  { %v1361_v17 = vclamps-f32 %v1311_v13, 1.0  ;;  %v349_v13 = vpack.c.bf16 %v1369_v8, %v1367_v7 }
  0x65   :  { %v345_v18 = vpack.c.bf16 %v1361_v17, %v1359_v16  ;;  %545 = vmatmul.bf16.vlgmr.msra.gmra.mxu3 %v349_v13  ;;  %v1310_v16 = vadd.f32 -1.0, %v162_v14  ;;  %v1312_v17 = vadd.f32 -1.0, %v164_v15 }
  0x67   :  { %535 = vmatmul.bf16.vlgmr.msra.gmra.mxu2 %v345_v18 }
  0x6e   :  { %568 = vmatmul.bf16.vlgmr.msrb.gmra.mxu1 %v330_v23  ;;  %v1348_v23 = vclamps-f32 %v1298_v19, 1.0 }
  0x70   :  { %v340_v27 = vpack.c.bf16 %v1350_v24, %v1348_v23  ;;  %v1360_v23 = vclamps-f32 %v1310_v16, 1.0  ;;  %v1362_v24 = vclamps-f32 %v1312_v17, 1.0  ;;  %v124_v17 = vld [vmem:[#allocation2 + $0x168] sm:$0xff] }
  0x72   :  { %v346_v29 = vpack.c.bf16 %v1362_v24, %v1360_v23  ;;  %v174_v23 = vmul.f32 2.0, %v124_v17  ;;  %v1641_v17 = vld [vmem:[#allocation6 + $0x28] sm:$0xff] }
  0x7e   :  { %573 = vmatmul.bf16.gmra.mxu1 %v332_v41  ;;  %v347_v41 = vpack.c.bf16 %v1365_v39, %v1363_v38 }
  0x80   :  { %540 = vmatmul.bf16.gmra.mxu2 %v347_v41  ;;  %v168_v41 = vmul.f32 2.0, %v118_v35 }
  0x82   :  { %v1316_v46 = vadd.f32 -1.0, %v168_v41 }
  0x84   :  { %v1366_v53 = vclamps-f32 %v1316_v46, 1.0  ;;  %v128_v46 = vld [vmem:[#allocation2 + $0x188] sm:$0xff] }
  0x86   :  { %v348_v56 = vpack.c.bf16 %v1366_v53, %v1364_v52 }
  0x8e   :  { %578 = vmatmul.bf16.gmra.mxu1 %v334_v50 }
  0x9e   :  { %583 = vmatmul.bf16.gmra.mxu1 %v336_v59 }
  0xab   :  { %v1829_v9 = vpop.f32.mrf.mxu1  ;;  %v496_v5 = vpop.f32.mrf.mxu0 }
  0xac   :  { %v497_v39 = vadd.f32 %v1872_v36, %v496_v5 }
  0xae   :  { %588 = vmatmul.bf16.gmra.mxu1 %v338_v6  ;;  %v344_v6 = vpack.c.bf16 %v1358_v0, %v1356_v63  ;;  %v172_v63 = vmul.f32 2.0, %v122_v60 }
  0xb0   :  { %v1320_v4 = vadd.f32 -1.0, %v172_v63  ;;  %v517_v63 = vadd.f32 %v1872_v36, %v1829_v9 }
  0xb2   :  { %v1370_v12 = vclamps-f32 %v1320_v4, 1.0 }
  0xb3   :  { %v1831_v21 = vpop.f32.mrf.mxu1  ;;  %v498_v19 = vpop.f32.mrf.mxu0 }
  0xb4   :  { %v499_v42 = vadd.f32 %v1872_v36, %v498_v19  ;;  %v350_v14 = vpack.c.bf16 %v1370_v12, %v1368_v11  ;;  %v126_v19 = vld [vmem:[#allocation2 + $0x178] sm:$0xff]  ;;  %v1642_v12 = vld [vmem:[#allocation6 + $0x30] sm:$0xff] }
  0xb5   :  { %v176_v24 = vmul.f32 2.0, %v126_v19 }
  0xbb   :  { %v1836_v30 = vpop.f32.mrf.mxu1  ;;  %v501_v38 = vpop.f32.mrf.mxu0 }
  0xbc   :  { %v502_v61 = vadd.f32 %v1872_v36, %v501_v38  ;;  %v522_v11 = vadd.f32 %v1872_v36, %v1836_v30 }
  0xbe   :  { %593 = vmatmul.bf16.gmra.mxu1 %v340_v27  ;;  %v1321_v27 = vadd.f32 -1.0, %v173_v25  ;;  %v177_v25 = vmul.f32 2.0, %v127_v20 }
  0xc0   :  { %v1371_v31 = vclamps-f32 %v1321_v27, 1.0  ;;  %v1325_v26 = vadd.f32 -1.0, %v177_v25 }
  0xc2   :  { %v351_v37 = vpack.c.bf16 %v1373_v32, %v1371_v31  ;;  %v1324_v31 = vadd.f32 -1.0, %v176_v24  ;;  %v1375_v32 = vclamps-f32 %v1325_v26, 1.0 }
  0xc3   :  { %v1844_v44 = vpop.f32.mrf.mxu1  ;;  %v503_v54 = vpop.f32.mrf.mxu0 }
  0xc4   :  { %550 = vmatmul.bf16.gmra.mxu3 %v351_v37  ;;  %v504_v1 = vadd.f32 %v1872_v36, %v503_v54  ;;  %v353_v35 = vpack.c.bf16 %v1375_v32, %v1375_v32  ;;  %v1374_v41 = vclamps-f32 %v1324_v31, 1.0  ;;  %v524_v9 = vadd.f32 %v1872_v36, %v1844_v44  ;;  %v1638_v32 = vld [vmem:[#allocation6 + $0x10] sm:$0xff] }
  0xcb   :  { %v1852_v50 = vpop.f32.mrf.mxu1  ;;  %v506_v0 = vpop.f32.mrf.mxu0 }
  0xcc   :  { %v507_v22 = vadd.f32 %v1872_v36, %v506_v0  ;;  %v519_v0 = vadd.f32 %v1872_v36, %v1831_v21  ;;  %v527_v30 = vadd.f32 %v1872_v36, %v1852_v50 }
  0xce   :  { %598 = vmatmul.bf16.gmra.mxu1 %v342_v49 }
  0xd3   :  { %v1860_v59 = vpop.f32.mrf.mxu1  ;;  %v508_v15 = vpop.f32.mrf.mxu0 }
  0xd4   :  { %v509_v27 = vadd.f32 %v1872_v36, %v508_v15  ;;  %555 = vmatmul.bf16.gmra.mxu3 %v353_v35 }
  0xdb   :  { %v1865_v10 = vpop.f32.mrf.mxu1  ;;  %v511_v37 = vpop.f32.mrf.mxu0 }
  0xdc   :  { %v532_v50 = vadd.f32 %v1872_v36, %v1865_v10 }
  0xde   :  { %603 = vmatmul.bf16.gmra.mxu1 %v344_v6 }
  0xe3   :  { %v1867_v18 = vpop.f32.mrf.mxu1 }
  0xeb   :  { %v569_v33 = vpop.f32.mrf.mxu1 }
  0xec   :  { %v570_v43 = vadd.f32 %v569_v33, %v497_v39 }
  0xee   :  { %608 = vmatmul.bf16.gmra.mxu1 %v346_v29  ;;  %v1441_v49 = vclamps-f32 %v570_v43, 1.0  ;;  %v1322_v29 = vadd.f32 -1.0, %v174_v23  ;;  %v529_v23 = vadd.f32 %v1872_v36, %v1860_v59  ;;  %v534_v59 = vadd.f32 %v1872_v36, %v1867_v18 }
  0xf0   :  { %v1372_v40 = vclamps-f32 %v1322_v29, 1.0  ;;  %v536_v29 = vpop.f32.mrf.mxu2 }
  0xf2   :  { %v352_v43 = vpack.c.bf16 %v1374_v41, %v1372_v40 }
  0xf3   :  { %v571_v47 = vpop.f32.mrf.mxu1 }
  0xf4   :  { %v572_v48 = vadd.f32 %v571_v47, %v499_v42  ;;  %v512_v47 = vadd.f32 %v1872_v36, %v511_v37 }
  0xf6   :  { %v1442_v51 = vclamps-f32 %v572_v48, 1.0  ;;  %v178_v48 = vmul.f32 2.0, %v128_v46 }
  0xf8   :  { %v683_v55 = vpack.c.bf16 %v1442_v51, %v1441_v49  ;;  %v513_v49 = vpop.f32.mrf.mxu0  ;;  %v1326_v53 = vadd.f32 -1.0, %v178_v48  ;;  %v538_v35 = vpop.f32.mrf.mxu2 }
  0xf9   :  { %v514_v51 = vadd.f32 %v1872_v36, %v513_v49  ;;  %v539_v10 = vadd.f32 %v1872_v36, %v538_v35 }
  0xfa   :  { %772 = vmatmul.bf16.vlgmr.msrb.gmra.mxu2 %v683_v55  ;;  %v1376_v58 = vclamps-f32 %v1326_v53, 1.0 }
  0xfb   :  { %v574_v57 = vpop.f32.mrf.mxu1 }
  0xfc   :  { %v575_v2 = vadd.f32 %v574_v57, %v502_v61  ;;  %v354_v61 = vpack.c.bf16 %v1376_v58, %v1376_v58 }
  0xfe   :  { %613 = vmatmul.bf16.gmra.mxu1 %v348_v56  ;;  %v1443_v7 = vclamps-f32 %v575_v2, 1.0 }
 0x103   :  { %v576_v5 = vpop.f32.mrf.mxu1 }
 0x104   :  { %v577_v6 = vadd.f32 %v576_v5, %v504_v1 }
 0x106   :  { %v1444_v8 = vclamps-f32 %v577_v6, 1.0 }
 0x108   :  { %v684_v13 = vpack.c.bf16 %v1444_v8, %v1443_v7  ;;  %v1643_v8 = vld [vmem:[#allocation6 + $0x38] sm:$0xff] }
 0x109   :  { %968 = vmatpush.bf16.msrb.mxu3 %v1643_v8 }
 0x10a   :  { %777 = vmatmul.bf16.gmra.mxu2 %v684_v13 }
 0x10b   :  { %v579_v16 = vpop.f32.mrf.mxu1 }
 0x10c   :  { %v580_v28 = vadd.f32 %v579_v16, %v507_v22  ;;  %v1640_v22 = vld [vmem:[#allocation6 + $0x20] sm:$0xff] }
 0x10d   :  { %969 = vmatpush.bf16.msrb.mxu3 %v1642_v12 }
 0x10e   :  { %618 = vmatmul.bf16.gmra.mxu1 %v350_v14  ;;  %v1445_v38 = vclamps-f32 %v580_v28, 1.0  ;;  %v1639_v28 = vld [vmem:[#allocation6 + $0x18] sm:$0xff] }
 0x111   :  { %970 = vmatpush.bf16.msrb.mxu3 %v1641_v17 }
 0x113   :  { %v581_v33 = vpop.f32.mrf.mxu1 }
 0x114   :  { %v582_v34 = vadd.f32 %v581_v33, %v509_v27 }
 0x115   :  { %971 = vmatpush.bf16.msrb.mxu3 %v1640_v22 }
 0x116   :  { %v1446_v39 = vclamps-f32 %v582_v34, 1.0  ;;  %v1637_v34 = vld [vmem:[#allocation6 + $0x8] sm:$0xff] }
 0x118   :  { %v685_v42 = vpack.c.bf16 %v1446_v39, %v1445_v38 }
 0x119   :  { %972 = vmatpush.bf16.msrb.mxu3 %v1639_v28 }
 0x11a   :  { %782 = vmatmul.bf16.gmra.mxu2 %v685_v42  ;;  %v1636_v42 = vld [vmem:[#allocation6] sm:$0xff] }
 0x11b   :  { %v584_v45 = vpop.f32.mrf.mxu1 }
 0x11c   :  { %v585_v52 = vadd.f32 %v584_v45, %v512_v47  ;;  %v541_v45 = vpop.f32.mrf.mxu2  ;;  %v537_v47 = vadd.f32 %v1872_v36, %v536_v29 }
 0x11d   :  { %973 = vmatpush.bf16.msrb.mxu3 %v1638_v32 }
 0x11e   :  { %623 = vmatmul.bf16.gmra.mxu1 %v352_v43  ;;  %v1447_v56 = vclamps-f32 %v585_v52, 1.0 }
 0x121   :  { %974 = vmatpush.bf16.msrb.mxu3 %v1637_v34 }
 0x123   :  { %v586_v54 = vpop.f32.mrf.mxu1 }
 0x124   :  { %v587_v55 = vadd.f32 %v586_v54, %v514_v51  ;;  %v546_v51 = vpop.f32.mrf.mxu3  ;;  %v543_v52 = vpop.f32.mrf.mxu2 }
 0x125   :  { %975 = vmatpush.bf16.msrb.mxu3 %v1636_v42 }
 0x126   :  { %v1448_v57 = vclamps-f32 %v587_v55, 1.0 }
 0x128   :  { %v686_v60 = vpack.c.bf16 %v1448_v57, %v1447_v56 }
 0x12a   :  { %787 = vmatmul.bf16.gmra.mxu2 %v686_v60  ;;  %v542_v60 = vadd.f32 %v1872_v36, %v541_v45 }
 0x12b   :  { %v589_v62 = vpop.f32.mrf.mxu1 }
 0x12c   :  { %v590_v1 = vadd.f32 %v589_v62, %v517_v63  ;;  %v548_v58 = vpop.f32.mrf.mxu3  ;;  %v544_v62 = vadd.f32 %v1872_v36, %v543_v52 }
 0x12e   :  { %628 = vmatmul.bf16.gmra.mxu1 %v354_v61  ;;  %v1449_v4 = vclamps-f32 %v590_v1, 1.0  ;;  %v1904_v61 = vld [vmem:[%s2125_s4] ss:$0 sm:$0xff] }
 0x133   :  { %v591_v2 = vpop.f32.mrf.mxu1 }
 0x134   :  { %v592_v3 = vadd.f32 %v591_v2, %v519_v0 }
 0x136   :  { %v1450_v5 = vclamps-f32 %v592_v3, 1.0 }
 0x138   :  { %v687_v6 = vpack.c.bf16 %v1450_v5, %v1449_v4 }
 0x13a   :  { %792 = vmatmul.bf16.gmra.mxu2 %v687_v6 }
 0x13b   :  { %v594_v7 = vpop.f32.mrf.mxu1 }
 0x13c   :  { %v595_v13 = vadd.f32 %v594_v7, %v522_v11 }
 0x13e   :  { %v1451_v15 = vclamps-f32 %v595_v13, 1.0 }
 0x143   :  { %v596_v14 = vpop.f32.mrf.mxu1 }
 0x144   :  { %v597_v21 = vadd.f32 %v596_v14, %v524_v9 }
 0x146   :  { %v1452_v16 = vclamps-f32 %v597_v21, 1.0  ;;  %v547_v21 = vadd.f32 %v1872_v36, %v546_v51 }
 0x147   :  { %v551_v7 = vpop.f32.mrf.mxu3 }
 0x148   :  { %v688_v19 = vpack.c.bf16 %v1452_v16, %v1451_v15  ;;  %v549_v16 = vadd.f32 %v1872_v36, %v548_v58 }
 0x14a   :  { %797 = vmatmul.bf16.gmra.mxu2 %v688_v19 }
 0x14b   :  { %v599_v20 = vpop.f32.mrf.mxu1 }
 0x14c   :  { %v600_v44 = vadd.f32 %v599_v20, %v527_v30 }
 0x14e   :  { %v1453_v26 = vclamps-f32 %v600_v44, 1.0 }
 0x14f   :  { %v553_v15 = vpop.f32.mrf.mxu3 }
 0x150   :  { %v554_v34 = vadd.f32 %v1872_v36, %v553_v15 }
 0x153   :  { %v601_v24 = vpop.f32.mrf.mxu1 }
 0x154   :  { %v602_v25 = vadd.f32 %v601_v24, %v529_v23 }
 0x156   :  { %v1454_v27 = vclamps-f32 %v602_v25, 1.0 }
 0x157   :  { %v556_v28 = vpop.f32.mrf.mxu3 }
 0x158   :  { %v689_v31 = vpack.c.bf16 %v1454_v27, %v1453_v26 }
 0x15a   :  { %802 = vmatmul.bf16.gmra.mxu2 %v689_v31 }
 0x15b   :  { %v604_v33 = vpop.f32.mrf.mxu1 }
 0x15c   :  { %v605_v37 = vadd.f32 %v604_v33, %v532_v50  ;;  %v552_v33 = vadd.f32 %v1872_v36, %v551_v7  ;;  %v1649_v7 = vld [vmem:[%s2128_s7 + $0x28] sm:$0xff] }
 0x15e   :  { %v1455_v40 = vclamps-f32 %v605_v37, 1.0 }
 0x15f   :  { %v558_v50 = vpop.f32.mrf.mxu3 }
 0x163   :  { %v606_v38 = vpop.f32.mrf.mxu1 }
 0x164   :  { %v607_v39 = vadd.f32 %v606_v38, %v534_v59 }
 0x166   :  { %v1456_v41 = vclamps-f32 %v607_v39, 1.0 }
 0x168   :  { %v690_v43 = vpack.c.bf16 %v1456_v41, %v1455_v40 }
 0x16a   :  { %807 = vmatmul.bf16.gmra.mxu2 %v690_v43 }
 0x16b   :  { %v609_v46 = vpop.f32.mrf.mxu1 }
 0x16c   :  { %v610_v48 = vadd.f32 %v609_v46, %v537_v47 }
 0x16e   :  { %v1457_v53 = vclamps-f32 %v610_v48, 1.0 }
 0x173   :  { %v611_v49 = vpop.f32.mrf.mxu1 }
 0x174   :  { %v612_v18 = vadd.f32 %v611_v49, %v539_v10  ;;  %v557_v10 = vadd.f32 %v1872_v36, %v556_v28  ;;  %v1651_v36 = vld [vmem:[%s2128_s7 + $0x38] sm:$0xff] }
 0x175   :  { %1172 = vmatpush.bf16.msrb.mxu0 %v1651_v36 }
 0x176   :  { %v1458_v54 = vclamps-f32 %v612_v18, 1.0 }
 0x178   :  { %v691_v55 = vpack.c.bf16 %v1458_v54, %v1457_v53 }
 0x17a   :  { %812 = vmatmul.bf16.gmra.mxu2 %v691_v55 }
 0x17b   :  { %v614_v56 = vpop.f32.mrf.mxu1 }
 0x17c   :  { %v615_v63 = vadd.f32 %v614_v56, %v542_v60 }
 0x17d   :  { %v773_v57 = vpop.f32.mrf.mxu2 }
 0x17e   :  { %v774_v1 = vadd.f32 %v1904_v61, %v773_v57  ;;  %v1459_v4 = vclamps-f32 %v615_v63, 1.0 }
 0x180   :  { %v1498_v8 = vclamps-f32 %v774_v1, 1.0 }
 0x183   :  { %v616_v0 = vpop.f32.mrf.mxu1 }
 0x184   :  { %v617_v2 = vadd.f32 %v616_v0, %v544_v62 }
 0x185   :  { %v775_v3 = vpop.f32.mrf.mxu2 }
 0x186   :  { %v1460_v5 = vclamps-f32 %v617_v2, 1.0  ;;  %v776_v6 = vadd.f32 %v1904_v61, %v775_v3 }
 0x188   :  { %v1499_v11 = vclamps-f32 %v776_v6, 1.0  ;;  %v692_v12 = vpack.c.bf16 %v1460_v5, %v1459_v4  ;;  %v1650_v4 = vld [vmem:[%s2128_s7 + $0x30] sm:$0xff] }
 0x189   :  { %1173 = vmatpush.bf16.msrb.mxu0 %v1650_v4 }
 0x18a   :  { %817 = vmatmul.bf16.gmra.mxu2 %v692_v12  ;;  %v887_v9 = vpack.c.bf16 %v1499_v11, %v1498_v8 }
 0x18b   :  { %v619_v13 = vpop.f32.mrf.mxu1 }
 0x18c   :  { %976 = vmatmul.bf16.vlgmr.msrb.gmra.mxu3 %v887_v9  ;;  %v620_v17 = vadd.f32 %v619_v13, %v547_v21 }
 0x18d   :  { %v778_v14 = vpop.f32.mrf.mxu2  ;;  %1174 = vmatpush.bf16.msrb.mxu0 %v1649_v7 }
 0x18e   :  { %v779_v20 = vadd.f32 %v1904_v61, %v778_v14  ;;  %v1461_v23 = vclamps-f32 %v620_v17, 1.0  ;;  %v1648_v14 = vld [vmem:[%s2128_s7 + $0x20] sm:$0xff] }
 0x190   :  { %v1500_v25 = vclamps-f32 %v779_v20, 1.0 }
 0x191   :  { %1175 = vmatpush.bf16.msrb.mxu0 %v1648_v14 }
 0x193   :  { %v621_v19 = vpop.f32.mrf.mxu1 }
 0x194   :  { %v622_v22 = vadd.f32 %v621_v19, %v549_v16  ;;  %v1647_v16 = vld [vmem:[%s2128_s7 + $0x18] sm:$0xff] }
 0x195   :  { %v780_v30 = vpop.f32.mrf.mxu2  ;;  %1176 = vmatpush.bf16.msrb.mxu0 %v1647_v16 }
 0x196   :  { %v1462_v44 = vclamps-f32 %v622_v22, 1.0  ;;  %v781_v24 = vadd.f32 %v1904_v61, %v780_v30 }
 0x198   :  { %v693_v26 = vpack.c.bf16 %v1462_v44, %v1461_v23  ;;  %v1501_v27 = vclamps-f32 %v781_v24, 1.0  ;;  %v1646_v23 = vld [vmem:[%s2128_s7 + $0x10] sm:$0xff] }
 0x199   :  { %1177 = vmatpush.bf16.msrb.mxu0 %v1646_v23 }
 0x19a   :  { %822 = vmatmul.bf16.gmra.mxu2 %v693_v26  ;;  %v888_v29 = vpack.c.bf16 %v1501_v27, %v1500_v25  ;;  %v1645_v25 = vld [vmem:[%s2128_s7 + $0x8] sm:$0xff] }
 0x19b   :  { %v624_v31 = vpop.f32.mrf.mxu1 }
 0x19c   :  { %981 = vmatmul.bf16.gmra.mxu3 %v888_v29  ;;  %v625_v35 = vadd.f32 %v624_v31, %v552_v33 }
 0x19d   :  { %v783_v32 = vpop.f32.mrf.mxu2  ;;  %1178 = vmatpush.bf16.msrb.mxu0 %v1645_v25 }
 0x19e   :  { %v784_v37 = vadd.f32 %v1904_v61, %v783_v32  ;;  %v1463_v40 = vclamps-f32 %v625_v35, 1.0  ;;  %v1644_v32 = vld [vmem:[%s2128_s7] sm:$0xff] }
 0x1a0   :  { %v1502_v43 = vclamps-f32 %v784_v37, 1.0 }
 0x1a1   :  { %1179 = vmatpush.bf16.msrb.mxu0 %v1644_v32 }
 0x1a3   :  { %v626_v59 = vpop.f32.mrf.mxu1 }
 0x1a4   :  { %v627_v38 = vadd.f32 %v626_v59, %v554_v34 }
 0x1a5   :  { %v785_v39 = vpop.f32.mrf.mxu2 }
 0x1a6   :  { %v1464_v41 = vclamps-f32 %v627_v38, 1.0  ;;  %v786_v42 = vadd.f32 %v1904_v61, %v785_v39 }
 0x1a8   :  { %v694_v45 = vpack.c.bf16 %v1464_v41, %v1463_v40  ;;  %v1503_v46 = vclamps-f32 %v786_v42, 1.0  ;;  %v1957_v42 = vld [vmem:[%s2127_s6] ss:$0 sm:$0xff] }
 0x1aa   :  { %827 = vmatmul.bf16.gmra.mxu2 %v694_v45  ;;  %v889_v47 = vpack.c.bf16 %v1503_v46, %v1502_v43 }
 0x1ab   :  { %v629_v48 = vpop.f32.mrf.mxu1 }
 0x1ac   :  { %986 = vmatmul.bf16.gmra.mxu3 %v889_v47  ;;  %v630_v51 = vadd.f32 %v629_v48, %v557_v10 }
 0x1ad   :  { %v788_v49 = vpop.f32.mrf.mxu2 }
 0x1ae   :  { %v1465_v18 = vclamps-f32 %v630_v51, 1.0  ;;  %v789_v53 = vadd.f32 %v1904_v61, %v788_v49 }
 0x1b0   :  { %v695_v56 = vpack.c.bf16 %v1465_v18, %v1465_v18  ;;  %v1504_v57 = vclamps-f32 %v789_v53, 1.0 }
 0x1b3   :  { %v631_v52 = vpop.f32.mrf.mxu1 }
 0x1b5   :  { %v790_v54 = vpop.f32.mrf.mxu2 }
 0x1b6   :  { %v791_v55 = vadd.f32 %v1904_v61, %v790_v54 }
 0x1b8   :  { %v1505_v58 = vclamps-f32 %v791_v55, 1.0 }
 0x1ba   :  { %v890_v60 = vpack.c.bf16 %v1505_v58, %v1504_v57  ;;  %832 = vmatmul.bf16.gmra.mxu2 %v695_v56 }
 0x1bc   :  { %991 = vmatmul.bf16.gmra.mxu3 %v890_v60 }
 0x1bd   :  { %v793_v62 = vpop.f32.mrf.mxu2 }
 0x1be   :  { %v794_v63 = vadd.f32 %v1904_v61, %v793_v62 }
 0x1c0   :  { %v1506_v2 = vclamps-f32 %v794_v63, 1.0 }
 0x1c5   :  { %v795_v0 = vpop.f32.mrf.mxu2 }
 0x1c6   :  { %v796_v1 = vadd.f32 %v1904_v61, %v795_v0 }
 0x1c8   :  { %v1507_v3 = vclamps-f32 %v796_v1, 1.0 }
 0x1ca   :  { %v891_v5 = vpack.c.bf16 %v1507_v3, %v1506_v2 }
 0x1cc   :  { %996 = vmatmul.bf16.gmra.mxu3 %v891_v5 }
 0x1cd   :  { %v798_v6 = vpop.f32.mrf.mxu2 }
 0x1ce   :  { %v799_v8 = vadd.f32 %v1904_v61, %v798_v6 }
 0x1d0   :  { %v1508_v9 = vclamps-f32 %v799_v8, 1.0 }
 0x1d5   :  { %v800_v11 = vpop.f32.mrf.mxu2 }
 0x1d6   :  { %v801_v12 = vadd.f32 %v1904_v61, %v800_v11 }
 0x1d8   :  { %v1509_v13 = vclamps-f32 %v801_v12, 1.0 }
 0x1da   :  { %v892_v21 = vpack.c.bf16 %v1509_v13, %v1508_v9 }
 0x1dc   :  { %1001 = vmatmul.bf16.gmra.mxu3 %v892_v21 }
 0x1dd   :  { %v803_v15 = vpop.f32.mrf.mxu2 }
 0x1de   :  { %v804_v17 = vadd.f32 %v1904_v61, %v803_v15 }
 0x1e0   :  { %v1510_v22 = vclamps-f32 %v804_v17, 1.0 }
 0x1e5   :  { %v805_v19 = vpop.f32.mrf.mxu2 }
 0x1e6   :  { %v806_v20 = vadd.f32 %v1904_v61, %v805_v19 }
 0x1e8   :  { %v1511_v30 = vclamps-f32 %v806_v20, 1.0 }
 0x1ea   :  { %v893_v44 = vpack.c.bf16 %v1511_v30, %v1510_v22 }
 0x1ec   :  { %1006 = vmatmul.bf16.gmra.mxu3 %v893_v44 }
 0x1ed   :  { %v808_v24 = vpop.f32.mrf.mxu2 }
 0x1ee   :  { %v809_v26 = vadd.f32 %v1904_v61, %v808_v24 }
 0x1f0   :  { %v1512_v29 = vclamps-f32 %v809_v26, 1.0 }
 0x1f5   :  { %v810_v27 = vpop.f32.mrf.mxu2 }
 0x1f6   :  { %v811_v28 = vadd.f32 %v1904_v61, %v810_v27 }
 0x1f8   :  { %v1513_v31 = vclamps-f32 %v811_v28, 1.0 }
 0x1fa   :  { %v894_v33 = vpack.c.bf16 %v1513_v31, %v1512_v29 }
 0x1fc   :  { %1011 = vmatmul.bf16.gmra.mxu3 %v894_v33 }
 0x1fd   :  { %v813_v50 = vpop.f32.mrf.mxu2 }
 0x1fe   :  { %v814_v34 = vadd.f32 %v1904_v61, %v813_v50 }
 0x200   :  { %v1514_v37 = vclamps-f32 %v814_v34, 1.0 }
 0x205   :  { %v815_v35 = vpop.f32.mrf.mxu2 }
 0x206   :  { %v816_v59 = vadd.f32 %v1904_v61, %v815_v35 }
 0x208   :  { %v1515_v38 = vclamps-f32 %v816_v59, 1.0 }
 0x20a   :  { %v895_v39 = vpack.c.bf16 %v1515_v38, %v1514_v37 }
 0x20c   :  { %1016 = vmatmul.bf16.gmra.mxu3 %v895_v39 }
 0x20d   :  { %v818_v40 = vpop.f32.mrf.mxu2 }
 0x20e   :  { %v819_v43 = vadd.f32 %v1904_v61, %v818_v40 }
 0x20f   :  { %v977_v41 = vpop.f32.mrf.mxu3 }
 0x210   :  { %v978_v46 = vadd.f32 %v1957_v42, %v977_v41  ;;  %v1516_v48 = vclamps-f32 %v819_v43, 1.0 }
 0x212   :  { %v1555_v18 = vclamps-f32 %v978_v46, 1.0 }
 0x215   :  { %v820_v45 = vpop.f32.mrf.mxu2 }
 0x216   :  { %v821_v47 = vadd.f32 %v1904_v61, %v820_v45 }
 0x217   :  { %v979_v10 = vpop.f32.mrf.mxu3 }
 0x218   :  { %v1517_v49 = vclamps-f32 %v821_v47, 1.0  ;;  %v980_v51 = vadd.f32 %v1957_v42, %v979_v10 }
 0x21a   :  { %v896_v52 = vpack.c.bf16 %v1517_v49, %v1516_v48  ;;  %v1556_v53 = vclamps-f32 %v980_v51, 1.0 }
 0x21c   :  { %1021 = vmatmul.bf16.gmra.mxu3 %v896_v52  ;;  %v1091_v54 = vpack.c.bf16 %v1556_v53, %v1555_v18 }
 0x21d   :  { %v823_v55 = vpop.f32.mrf.mxu2 }
 0x21e   :  { %1180 = vmatmul.bf16.vlgmr.msrb.gmra.mxu0 %v1091_v54  ;;  %v824_v57 = vadd.f32 %v1904_v61, %v823_v55 }
 0x21f   :  { %v982_v56 = vpop.f32.mrf.mxu3 }
 0x220   :  { %v983_v60 = vadd.f32 %v1957_v42, %v982_v56  ;;  %v1518_v63 = vclamps-f32 %v824_v57, 1.0 }
 0x222   :  { %v1557_v2 = vclamps-f32 %v983_v60, 1.0 }
 0x225   :  { %v825_v58 = vpop.f32.mrf.mxu2 }
 0x226   :  { %v826_v62 = vadd.f32 %v1904_v61, %v825_v58 }
 0x227   :  { %v984_v36 = vpop.f32.mrf.mxu3 }
 0x228   :  { %v1519_v0 = vclamps-f32 %v826_v62, 1.0  ;;  %v985_v1 = vadd.f32 %v1957_v42, %v984_v36 }
 0x22a   :  { %v897_v3 = vpack.c.bf16 %v1519_v0, %v1518_v63  ;;  %v1558_v4 = vclamps-f32 %v985_v1, 1.0  ;;  %v1987_v1 = vld [vmem:[%s2129_s8] ss:$0 sm:$0xff] }
 0x22c   :  { %1026 = vmatmul.bf16.gmra.mxu3 %v897_v3  ;;  %v1092_v5 = vpack.c.bf16 %v1558_v4, %v1557_v2 }
 0x22d   :  { %v828_v6 = vpop.f32.mrf.mxu2 }
 0x22e   :  { %1185 = vmatmul.bf16.gmra.mxu0 %v1092_v5  ;;  %v829_v8 = vadd.f32 %v1904_v61, %v828_v6 }
 0x22f   :  { %v987_v7 = vpop.f32.mrf.mxu3 }
 0x230   :  { %v988_v12 = vadd.f32 %v1957_v42, %v987_v7  ;;  %v1520_v14 = vclamps-f32 %v829_v8, 1.0 }
 0x232   :  { %v1559_v16 = vclamps-f32 %v988_v12, 1.0 }
 0x235   :  { %v830_v11 = vpop.f32.mrf.mxu2 }
 0x236   :  { %v831_v9 = vadd.f32 %v1904_v61, %v830_v11 }
 0x237   :  { %v989_v13 = vpop.f32.mrf.mxu3 }
 0x238   :  { %v1521_v21 = vclamps-f32 %v831_v9, 1.0  ;;  %v990_v15 = vadd.f32 %v1957_v42, %v989_v13 }
 0x23a   :  { %v898_v17 = vpack.c.bf16 %v1521_v21, %v1520_v14  ;;  %v1560_v19 = vclamps-f32 %v990_v15, 1.0 }
 0x23c   :  { %1031 = vmatmul.bf16.gmra.mxu3 %v898_v17  ;;  %v1093_v20 = vpack.c.bf16 %v1560_v19, %v1559_v16 }
 0x23d   :  { %v833_v22 = vpop.f32.mrf.mxu2 }
 0x23e   :  { %1190 = vmatmul.bf16.gmra.mxu0 %v1093_v20  ;;  %v834_v23 = vadd.f32 %v1904_v61, %v833_v22 }
 0x23f   :  { %v992_v30 = vpop.f32.mrf.mxu3 }
 0x240   :  { %v1522_v44 = vclamps-f32 %v834_v23, 1.0  ;;  %v993_v25 = vadd.f32 %v1957_v42, %v992_v30 }
 0x242   :  { %v899_v27 = vpack.c.bf16 %v1522_v44, %v1522_v44  ;;  %v1561_v29 = vclamps-f32 %v993_v25, 1.0 }
 0x245   :  { %v835_v24 = vpop.f32.mrf.mxu2 }
 0x247   :  { %v994_v26 = vpop.f32.mrf.mxu3 }
 0x248   :  { %v995_v28 = vadd.f32 %v1957_v42, %v994_v26 }
 0x24a   :  { %v1562_v31 = vclamps-f32 %v995_v28, 1.0 }
 0x24c   :  { %1036 = vmatmul.bf16.gmra.mxu3 %v899_v27  ;;  %v1094_v32 = vpack.c.bf16 %v1562_v31, %v1561_v29 }
 0x24e   :  { %1195 = vmatmul.bf16.gmra.mxu0 %v1094_v32 }
 0x24f   :  { %v997_v33 = vpop.f32.mrf.mxu3 }
 0x250   :  { %v998_v50 = vadd.f32 %v1957_v42, %v997_v33 }
 0x252   :  { %v1563_v61 = vclamps-f32 %v998_v50, 1.0 }
 0x257   :  { %v999_v34 = vpop.f32.mrf.mxu3 }
 0x258   :  { %v1000_v35 = vadd.f32 %v1957_v42, %v999_v34 }
 0x25a   :  { %v1564_v59 = vclamps-f32 %v1000_v35, 1.0 }
 0x25c   :  { %v1095_v37 = vpack.c.bf16 %v1564_v59, %v1563_v61 }
 0x25e   :  { %1200 = vmatmul.bf16.gmra.mxu0 %v1095_v37 }
 0x25f   :  { %v1002_v38 = vpop.f32.mrf.mxu3 }
 0x260   :  { %v1003_v39 = vadd.f32 %v1957_v42, %v1002_v38 }
 0x262   :  { %v1565_v43 = vclamps-f32 %v1003_v39, 1.0 }
 0x267   :  { %v1004_v40 = vpop.f32.mrf.mxu3 }
 0x268   :  { %v1005_v41 = vadd.f32 %v1957_v42, %v1004_v40 }
 0x26a   :  { %v1566_v45 = vclamps-f32 %v1005_v41, 1.0 }
 0x26c   :  { %v1096_v46 = vpack.c.bf16 %v1566_v45, %v1565_v43 }
 0x26e   :  { %1205 = vmatmul.bf16.gmra.mxu0 %v1096_v46 }
 0x26f   :  { %v1007_v47 = vpop.f32.mrf.mxu3 }
 0x270   :  { %v1008_v10 = vadd.f32 %v1957_v42, %v1007_v47 }
 0x272   :  { %v1567_v51 = vclamps-f32 %v1008_v10, 1.0 }
 0x277   :  { %v1009_v48 = vpop.f32.mrf.mxu3 }
 0x278   :  { %v1010_v49 = vadd.f32 %v1957_v42, %v1009_v48 }
 0x27a   :  { %v1568_v18 = vclamps-f32 %v1010_v49, 1.0 }
 0x27c   :  { %v1097_v52 = vpack.c.bf16 %v1568_v18, %v1567_v51 }
 0x27e   :  { %1210 = vmatmul.bf16.gmra.mxu0 %v1097_v52 }
 0x27f   :  { %v1012_v53 = vpop.f32.mrf.mxu3 }
 0x280   :  { %v1013_v54 = vadd.f32 %v1957_v42, %v1012_v53 }
 0x282   :  { %v1569_v57 = vclamps-f32 %v1013_v54, 1.0 }
 0x287   :  { %v1014_v55 = vpop.f32.mrf.mxu3 }
 0x288   :  { %v1015_v56 = vadd.f32 %v1957_v42, %v1014_v55 }
 0x28a   :  { %v1570_v58 = vclamps-f32 %v1015_v56, 1.0 }
 0x28c   :  { %v1098_v60 = vpack.c.bf16 %v1570_v58, %v1569_v57 }
 0x28e   :  { %1215 = vmatmul.bf16.gmra.mxu0 %v1098_v60 }
 0x28f   :  { %v1017_v62 = vpop.f32.mrf.mxu3 }
 0x290   :  { %v1018_v36 = vadd.f32 %v1957_v42, %v1017_v62 }
 0x292   :  { %v1571_v2 = vclamps-f32 %v1018_v36, 1.0 }
 0x297   :  { %v1019_v63 = vpop.f32.mrf.mxu3 }
 0x298   :  { %v1020_v0 = vadd.f32 %v1957_v42, %v1019_v63 }
 0x29a   :  { %v1572_v3 = vclamps-f32 %v1020_v0, 1.0 }
 0x29b   :  { %v1181_v4 = vpop.f32.mrf.mxu0 }
 0x29c   :  { %v1099_v5 = vpack.c.bf16 %v1572_v3, %v1571_v2  ;;  %v1182_v6 = vadd.f32 %v1987_v1, %v1181_v4 }
 0x29e   :  { %1246 = vst.msk [vmem:[%s2130_s9] sm:$0xff] %vm1245_vm0, %v1182_v6  ;;  %1220 = vmatmul.bf16.gmra.mxu0 %v1099_v5 }
 0x29f   :  { %v1022_v7 = vpop.f32.mrf.mxu3 }
 0x2a0   :  { %v1023_v12 = vadd.f32 %v1957_v42, %v1022_v7 }
 0x2a2   :  { %v1573_v14 = vclamps-f32 %v1023_v12, 1.0 }
 0x2a3   :  { %v1183_v8 = vpop.f32.mrf.mxu0 }
 0x2a4   :  { %v1184_v11 = vadd.f32 %v1987_v1, %v1183_v8 }
 0x2a6   :  { %1247 = vst.msk [vmem:[%s2130_s9 + $0x8] sm:$0xff] %vm1245_vm0, %v1184_v11 }
 0x2a7   :  { %v1024_v9 = vpop.f32.mrf.mxu3 }
 0x2a8   :  { %v1025_v13 = vadd.f32 %v1957_v42, %v1024_v9 }
 0x2aa   :  { %v1574_v21 = vclamps-f32 %v1025_v13, 1.0 }
 0x2ab   :  { %v1186_v15 = vpop.f32.mrf.mxu0 }
 0x2ac   :  { %v1100_v16 = vpack.c.bf16 %v1574_v21, %v1573_v14  ;;  %v1187_v17 = vadd.f32 %v1987_v1, %v1186_v15 }
 0x2ae   :  { %1248 = vst.msk [vmem:[%s2130_s9 + $0x10] sm:$0xff] %vm1245_vm0, %v1187_v17  ;;  %1225 = vmatmul.bf16.gmra.mxu0 %v1100_v16 }
 0x2af   :  { %v1027_v19 = vpop.f32.mrf.mxu3 }
 0x2b0   :  { %v1028_v30 = vadd.f32 %v1957_v42, %v1027_v19 }
 0x2b2   :  { %v1575_v24 = vclamps-f32 %v1028_v30, 1.0 }
 0x2b3   :  { %v1188_v20 = vpop.f32.mrf.mxu0 }
 0x2b4   :  { %v1189_v22 = vadd.f32 %v1987_v1, %v1188_v20 }
 0x2b6   :  { %1249 = vst.msk [vmem:[%s2130_s9 + $0x18] sm:$0xff] %vm1245_vm0, %v1189_v22 }
 0x2b7   :  { %v1029_v23 = vpop.f32.mrf.mxu3 }
 0x2b8   :  { %v1030_v44 = vadd.f32 %v1957_v42, %v1029_v23 }
 0x2ba   :  { %v1576_v25 = vclamps-f32 %v1030_v44, 1.0 }
 0x2bb   :  { %v1191_v26 = vpop.f32.mrf.mxu0 }
 0x2bc   :  { %v1101_v27 = vpack.c.bf16 %v1576_v25, %v1575_v24  ;;  %v1192_v28 = vadd.f32 %v1987_v1, %v1191_v26 }
 0x2be   :  { %1250 = vst.msk [vmem:[%s2130_s9 + $0x20] sm:$0xff] %vm1245_vm0, %v1192_v28  ;;  %1230 = vmatmul.bf16.gmra.mxu0 %v1101_v27 }
 0x2bf   :  { %v1032_v29 = vpop.f32.mrf.mxu3 }
 0x2c0   :  { %v1033_v33 = vadd.f32 %v1957_v42, %v1032_v29 }
 0x2c2   :  { %v1577_v35 = vclamps-f32 %v1033_v33, 1.0 }
 0x2c3   :  { %v1193_v31 = vpop.f32.mrf.mxu0 }
 0x2c4   :  { %v1194_v32 = vadd.f32 %v1987_v1, %v1193_v31 }
 0x2c6   :  { %1251 = vst.msk [vmem:[%s2130_s9 + $0x28] sm:$0xff] %vm1245_vm0, %v1194_v32 }
 0x2c7   :  { %v1034_v50 = vpop.f32.mrf.mxu3 }
 0x2c8   :  { %v1035_v34 = vadd.f32 %v1957_v42, %v1034_v50 }
 0x2ca   :  { %v1578_v61 = vclamps-f32 %v1035_v34, 1.0 }
 0x2cb   :  { %v1196_v59 = vpop.f32.mrf.mxu0 }
 0x2cc   :  { %v1102_v37 = vpack.c.bf16 %v1578_v61, %v1577_v35  ;;  %v1197_v38 = vadd.f32 %v1987_v1, %v1196_v59 }
 0x2ce   :  { %1252 = vst.msk [vmem:[%s2130_s9 + $0x30] sm:$0xff] %vm1245_vm0, %v1197_v38  ;;  %1235 = vmatmul.bf16.gmra.mxu0 %v1102_v37 }
 0x2cf   :  { %v1037_v39 = vpop.f32.mrf.mxu3 }
 0x2d0   :  { %v1038_v40 = vadd.f32 %v1957_v42, %v1037_v39 }
 0x2d2   :  { %v1579_v45 = vclamps-f32 %v1038_v40, 1.0 }
 0x2d3   :  { %v1198_v41 = vpop.f32.mrf.mxu0 }
 0x2d4   :  { %v1199_v43 = vadd.f32 %v1987_v1, %v1198_v41  ;;  %v1103_v47 = vpack.c.bf16 %v1579_v45, %v1579_v45 }
 0x2d6   :  { %1253 = vst.msk [vmem:[%s2130_s9 + $0x38] sm:$0xff] %vm1245_vm0, %v1199_v43 }
 0x2d7   :  { %v1039_v46 = vpop.f32.mrf.mxu3 }
 0x2db   :  { %v1201_v10 = vpop.f32.mrf.mxu0 }
 0x2dc   :  { %v1202_v48 = vadd.f32 %v1987_v1, %v1201_v10 }
 0x2de   :  { %1254 = vst.msk [vmem:[%s2130_s9 + $0x40] sm:$0xff] %vm1245_vm0, %v1202_v48  ;;  %1240 = vmatmul.bf16.gmra.mxu0 %v1103_v47 }
 0x2e3   :  { %v1203_v42 = vpop.f32.mrf.mxu0 }
 0x2e4   :  { %v1204_v49 = vadd.f32 %v1987_v1, %v1203_v42 }
 0x2e6   :  { %1255 = vst.msk [vmem:[%s2130_s9 + $0x48] sm:$0xff] %vm1245_vm0, %v1204_v49 }
 0x2eb   :  { %v1206_v51 = vpop.f32.mrf.mxu0 }
 0x2ec   :  { %v1207_v18 = vadd.f32 %v1987_v1, %v1206_v51 }
 0x2ee   :  { %1256 = vst.msk [vmem:[%s2130_s9 + $0x50] sm:$0xff] %vm1245_vm0, %v1207_v18 }
 0x2f3   :  { %v1208_v52 = vpop.f32.mrf.mxu0 }
 0x2f4   :  { %v1209_v53 = vadd.f32 %v1987_v1, %v1208_v52 }
 0x2f6   :  { %1257 = vst.msk [vmem:[%s2130_s9 + $0x58] sm:$0xff] %vm1245_vm0, %v1209_v53 }
 0x2fb   :  { %v1211_v54 = vpop.f32.mrf.mxu0 }
 0x2fc   :  { %v1212_v55 = vadd.f32 %v1987_v1, %v1211_v54 }
 0x2fe   :  { %1258 = vst.msk [vmem:[%s2130_s9 + $0x60] sm:$0xff] %vm1245_vm0, %v1212_v55 }
 0x303   :  { %v1213_v56 = vpop.f32.mrf.mxu0 }
 0x304   :  { %v1214_v57 = vadd.f32 %v1987_v1, %v1213_v56 }
 0x306   :  { %1259 = vst.msk [vmem:[%s2130_s9 + $0x68] sm:$0xff] %vm1245_vm0, %v1214_v57 }
 0x30b   :  { %v1216_v58 = vpop.f32.mrf.mxu0 }
 0x30c   :  { %v1217_v60 = vadd.f32 %v1987_v1, %v1216_v58 }
 0x30e   :  { %1260 = vst.msk [vmem:[%s2130_s9 + $0x70] sm:$0xff] %vm1245_vm0, %v1217_v60 }
 0x313   :  { %v1218_v62 = vpop.f32.mrf.mxu0 }
 0x314   :  { %v1219_v36 = vadd.f32 %v1987_v1, %v1218_v62 }
 0x316   :  { %1261 = vst.msk [vmem:[%s2130_s9 + $0x78] sm:$0xff] %vm1245_vm0, %v1219_v36 }
 0x31b   :  { %v1221_v63 = vpop.f32.mrf.mxu0 }
 0x31c   :  { %v1222_v0 = vadd.f32 %v1987_v1, %v1221_v63 }
 0x31e   :  { %1262 = vst.msk [vmem:[%s2130_s9 + $0x80] sm:$0xff] %vm1245_vm0, %v1222_v0 }
 0x323   :  { %v1223_v2 = vpop.f32.mrf.mxu0 }
 0x324   :  { %v1224_v3 = vadd.f32 %v1987_v1, %v1223_v2 }
 0x326   :  { %1263 = vst.msk [vmem:[%s2130_s9 + $0x88] sm:$0xff] %vm1245_vm0, %v1224_v3 }
 0x32b   :  { %v1226_v4 = vpop.f32.mrf.mxu0 }
 0x32c   :  { %v1227_v5 = vadd.f32 %v1987_v1, %v1226_v4 }
 0x32e   :  { %1264 = vst.msk [vmem:[%s2130_s9 + $0x90] sm:$0xff] %vm1245_vm0, %v1227_v5 }
 0x333   :  { %v1228_v6 = vpop.f32.mrf.mxu0 }
 0x334   :  { %v1229_v7 = vadd.f32 %v1987_v1, %v1228_v6 }
 0x336   :  { %1265 = vst.msk [vmem:[%s2130_s9 + $0x98] sm:$0xff] %vm1245_vm0, %v1229_v7 }
 0x33b   :  { %v1231_v8 = vpop.f32.mrf.mxu0 }
 0x33c   :  { %v1232_v11 = vadd.f32 %v1987_v1, %v1231_v8 }
 0x33e   :  { %1266 = vst.msk [vmem:[%s2130_s9 + $0xa0] sm:$0xff] %vm1245_vm0, %v1232_v11 }
 0x343   :  { %v1233_v12 = vpop.f32.mrf.mxu0 }
 0x344   :  { %v1234_v9 = vadd.f32 %v1987_v1, %v1233_v12 }
 0x346   :  { %1267 = vst.msk [vmem:[%s2130_s9 + $0xa8] sm:$0xff] %vm1245_vm0, %v1234_v9 }
 0x34b   :  { %v1236_v13 = vpop.f32.mrf.mxu0 }
 0x34c   :  { %v1237_v14 = vadd.f32 %v1987_v1, %v1236_v13 }
 0x34e   :  { %1268 = vst.msk [vmem:[%s2130_s9 + $0xb0] sm:$0xff] %vm1245_vm0, %v1237_v14 }
 0x353   :  { %v1238_v21 = vpop.f32.mrf.mxu0 }
 0x354   :  { %v1239_v15 = vadd.f32 %v1987_v1, %v1238_v21 }
 0x356   :  { %1269 = vst.msk [vmem:[%s2130_s9 + $0xb8] sm:$0xff] %vm1245_vm0, %v1239_v15 }
 0x35b   :  { %v1241_v16 = vpop.f32.mrf.mxu0 }
 0x35c   :  { %v1242_v17 = vadd.f32 %v1987_v1, %v1241_v16 }
 0x35e   :  { %1270 = vst.msk [vmem:[%s2130_s9 + $0xc0] sm:$0xff] %vm1245_vm0, %v1242_v17 }
 0x363   :  { %v1243_v19 = vpop.f32.mrf.mxu0 }
 0x364   :  { %1275 = vsyncpa [#allocation3], 1 }
 0x365   :  { %1276 = vsyncpa [#allocation5], 1 }

</bundles_post_ra>
